<compile_context>
chip_gen: v7x
topology: tpu7x:2x2x1
jax: 0.10.0
libtpu: 0.0.40
codegen_flags: <defaults>
</compile_context>

<pallas_src>
import functools

import jax
import jax.numpy as jnp
from jax.experimental import pallas as pl
from jax.experimental.pallas import tpu as pltpu

_MIB = 1024 * 1024
# Budgets sized against v7x (64 MiB physical VMEM per TensorCore, 32 MiB
# default scoped); v5e/v6e (128 MiB) have even more headroom.
_VMEM_BUDGET = 40 * _MIB        # total double-buffered working set target
_H_RESIDENT_BUDGET = 24 * _MIB  # max (double-buffered) resident-H footprint


def _round_up(x, m):
    return (x + m - 1) // m * m


def _largest_divisor_tile(n, cap=512):
    for cand in (1024, 512, 256, 128):
        if cand <= cap and cand <= n and n % cand == 0:
            return cand
    return min(n, 128)


def _prop_plan(N, outc_p):
    """Pick (tm, tk, n_p, h_resident, vmem_estimate) for the P @ H stage."""
    # Row tile / row-padding granularity. Large tiles for HBM streaming
    # efficiency, but keep >= 2 row tiles whenever possible so the "parallel"
    # row axis feeds both v7x TensorCores.
    if N >= 1024:
        tm = 512
    elif N >= 512:
        tm = 256
    else:
        tm = 128
    n_p = _round_up(N, tm)

    # Keep H fully VMEM-resident across the whole prop call when it fits
    # (budgeting 2x in case the constant-index block is double-buffered).
    h_resident = 2 * n_p * outc_p * 4 <= _H_RESIDENT_BUDGET

    tk = 128
    for cand in (1024, 512, 256, 128):
        if cand > n_p or n_p % cand != 0:
            continue
        p_b = 2 * tm * cand * 4
        h_b = 2 * (n_p if h_resident else cand) * outc_p * 4
        o_b = 2 * tm * outc_p * 4
        if p_b + h_b + o_b <= _VMEM_BUDGET:
            tk = cand
            break

    vmem_est = (2 * tm * tk * 4
                + 2 * (n_p if h_resident else tk) * outc_p * 4
                + 2 * tm * outc_p * 4)
    return tm, tk, n_p, h_resident, vmem_est


def _vmem_limit(estimate):
    # Generous margin over our (already conservative) estimate, capped safely
    # under/at every generation's physical VMEM.
    return int(min(56 * _MIB, max(32 * _MIB, estimate * 3 // 2 + 4 * _MIB)))


# --------------------- Linear: H = X @ W^T + b ---------------------
def _linear_kernel(x_ref, wt_ref, b_ref, h_ref):
    # One MXU matmul per row tile; bias broadcast on the VPU; written straight
    # to the lane-dense output block.
    h_ref[...] = (
        jnp.dot(x_ref[...], wt_ref[...], preferred_element_type=jnp.float32)
        + b_ref[...]
    )


# --------------------- Propagation: out = P @ H ---------------------
def _prop_kernel_resident(tk, p_ref, h_ref, o_ref):
    # H is fully resident in VMEM; slice the k-th contraction block in-kernel.
    k = pl.program_id(1)

    @pl.when(k == 0)
    def _():
        o_ref[...] = jnp.zeros_like(o_ref)

    start = pl.multiple_of(k * tk, tk)
    o_ref[...] += jnp.dot(
        p_ref[...], h_ref[pl.ds(start, tk), :],
        preferred_element_type=jnp.float32,
    )


def _prop_kernel_streamed(p_ref, h_ref, o_ref):
    # Fallback when H is too large to keep resident: H streamed per k tile.
    k = pl.program_id(1)

    @pl.when(k == 0)
    def _():
        o_ref[...] = jnp.zeros_like(o_ref)

    o_ref[...] += jnp.dot(
        p_ref[...], h_ref[...], preferred_element_type=jnp.float32
    )


@jax.jit
def gcn_conv(x, weight, bias, prop_matrix):
    """Fused GCNConv forward.

    x:           [N, inc]    float32
    weight:      [outc, inc] float32  (PyTorch nn.Linear layout)
    bias:        [outc]      float32
    prop_matrix: [N, N]      float32
    returns:     [N, outc]   float32
    """
    N, inc = x.shape
    outc = weight.shape[0]

    inc_p = _round_up(inc, 128)
    outc_p = _round_up(outc, 128)
    tm, tk, n_p, h_resident, prop_vmem = _prop_plan(N, outc_p)

    # ---- host-side padding (skipped whenever already aligned) ----
    # Zero padding is numerically safe: padded X rows produce H rows equal to
    # the bias, but those rows only ever meet zero P columns; padded P rows and
    # extra W/bias columns produce rows/cols that are sliced off at the end.
    x_p = x
    if (N, inc) != (n_p, inc_p):
        x_p = jnp.zeros((n_p, inc_p), jnp.float32).at[:N, :inc].set(x)

    wt = weight.T
    wt_p = wt
    if (inc, outc) != (inc_p, outc_p):
        wt_p = jnp.zeros((inc_p, outc_p), jnp.float32).at[:inc, :outc].set(wt)

    if outc != outc_p:
        b_p = jnp.zeros((1, outc_p), jnp.float32).at[0, :outc].set(bias)
    else:
        b_p = bias.reshape(1, outc_p)

    # Skip the dense zero-pad copy of the dominant P stream when tile-aligned.
    if N != n_p:
        p_p = jnp.zeros((n_p, n_p), jnp.float32).at[:N, :N].set(prop_matrix)
    else:
        p_p = prop_matrix

    # ---- H = X @ W^T + b, computed once, kept in HBM ([n_p, outc_p]) ----
    tlin = _largest_divisor_tile(n_p, cap=512)
    lin_vmem = (2 * tlin * inc_p + 2 * inc_p * outc_p
                + 2 * outc_p + 2 * tlin * outc_p) * 4
    h = pl.pallas_call(
        _linear_kernel,
        out_shape=jax.ShapeDtypeStruct((n_p, outc_p), jnp.float32),
        grid_spec=pltpu.PrefetchScalarGridSpec(
            num_scalar_prefetch=0,
            grid=(n_p // tlin,),
            in_specs=[
                pl.BlockSpec((tlin, inc_p), lambda i: (i, 0)),     # X row tile
                pl.BlockSpec((inc_p, outc_p), lambda i: (0, 0)),   # W^T resident
                pl.BlockSpec((1, outc_p), lambda i: (0, 0)),       # bias
            ],
            out_specs=pl.BlockSpec((tlin, outc_p), lambda i: (i, 0)),
        ),
        compiler_params=pltpu.CompilerParams(
            dimension_semantics=("parallel",),
            vmem_limit_bytes=_vmem_limit(lin_vmem),
        ),
        cost_estimate=pl.CostEstimate(
            flops=2 * n_p * inc_p * outc_p,
            transcendentals=0,
            bytes_accessed=4 * (n_p * inc_p + inc_p * outc_p + outc_p
                                + n_p * outc_p),
        ),
    )(x_p, wt_p, b_p)

    # ---- out = P @ H, tiled over (row tiles, contraction tiles) ----
    if h_resident:
        prop_kernel = functools.partial(_prop_kernel_resident, tk)
        h_spec = pl.BlockSpec((n_p, outc_p), lambda i, k: (0, 0))  # fetched once
        h_bytes = n_p * outc_p * 4
    else:
        prop_kernel = _prop_kernel_streamed
        h_spec = pl.BlockSpec((tk, outc_p), lambda i, k: (k, 0))
        h_bytes = (n_p // tm) * n_p * outc_p * 4

    out_p = pl.pallas_call(
        prop_kernel,
        out_shape=jax.ShapeDtypeStruct((n_p, outc_p), jnp.float32),
        grid_spec=pltpu.PrefetchScalarGridSpec(
            num_scalar_prefetch=0,
            grid=(n_p // tm, n_p // tk),
            in_specs=[
                pl.BlockSpec((tm, tk), lambda i, k: (i, k)),   # P tile (streamed)
                h_spec,
            ],
            out_specs=pl.BlockSpec((tm, outc_p), lambda i, k: (i, 0)),
        ),
        compiler_params=pltpu.CompilerParams(
            dimension_semantics=("parallel", "arbitrary"),
            vmem_limit_bytes=_vmem_limit(prop_vmem),
        ),
        cost_estimate=pl.CostEstimate(
            flops=2 * n_p * n_p * outc_p,
            transcendentals=0,
            bytes_accessed=4 * n_p * n_p + h_bytes + 4 * n_p * outc_p,
        ),
    )(p_p, h)

    return out_p[:N, :outc]


def reference(x, weight, bias, prop_matrix):
    return prop_matrix @ (x @ weight.T + bias)


def _run_case(key, N, inc, outc):
    k_x, k_p, k_w, k_b = jax.random.split(key, 4)
    x = jax.random.normal(k_x, (N, inc), dtype=jnp.float32)
    prop_matrix = jax.random.normal(k_p, (N, N), dtype=jnp.float32)
    # Deterministic init mimicking nn.Linear.reset_parameters:
    # weight, bias ~ U(-1/sqrt(inc), 1/sqrt(inc))
    bound = 1.0 / (inc ** 0.5)
    weight = jax.random.uniform(
        k_w, (outc, inc), minval=-bound, maxval=bound, dtype=jnp.float32
    )
    bias = jax.random.uniform(
        k_b, (outc,), minval=-bound, maxval=bound, dtype=jnp.float32
    )

    out = gcn_conv(x, weight, bias, prop_matrix)
    out = jax.block_until_ready(out)

    ref = reference(x, weight, bias, prop_matrix)
    assert out.shape == (N, outc)
    assert jnp.allclose(out, ref, atol=1e-4, rtol=1e-4), (
        f"mismatch vs reference at N={N}, inc={inc}, outc={outc}"
    )


if __name__ == "__main__":
    key = jax.random.PRNGKey(0)
    k1, k2 = jax.random.split(key)

    # Small case (single tile, padded dims).
    _run_case(k1, N=64, inc=32, outc=16)
    # Multi row-tile + multi k-tile case (exercises in-place o_ref accumulation
    # and resident-H in-kernel slicing with unaligned channel counts).
    _run_case(k2, N=384, inc=40, outc=24)

    print("KERNEL_OK")
</pallas_src>

<mosaic_0001>
module attributes {stable_mosaic.version = 11 : i64} {
  func.func @_linear_kernel(%arg0: i32, %arg1: memref<128x128xf32, #tpu.memory_space<vmem>>, %arg2: memref<128x128xf32, #tpu.memory_space<vmem>>, %arg3: memref<1x128xf32, #tpu.memory_space<vmem>>, %arg4: memref<128x128xf32, #tpu.memory_space<vmem>>) attributes {dimension_semantics = [#tpu.dimension_semantics<parallel>], iteration_bounds = array<i64: 1>, scalar_prefetch = 0 : i64, scratch_operands = 0 : i64, tpu.core_type = #tpu.core_type<tc>, window_params = [{transform_indices = @transform_0, window_bounds = array<i64: 128, 128>}, {pipeline_mode = #tpu.pipeline_mode<synchronous>, transform_indices = @transform_1, window_bounds = array<i64: 128, 128>}, {pipeline_mode = #tpu.pipeline_mode<synchronous>, transform_indices = @transform_2, window_bounds = array<i64: 1, 128>}, {transform_indices = @transform_3, window_bounds = array<i64: 128, 128>}]} {
    %c0 = arith.constant 0 : index
    %c0_0 = arith.constant 0 : index
    %0 = vector.load %arg1[%c0, %c0_0] : memref<128x128xf32, #tpu.memory_space<vmem>>, vector<128x128xf32>
    %c0_1 = arith.constant 0 : index
    %c0_2 = arith.constant 0 : index
    %1 = vector.load %arg2[%c0_1, %c0_2] : memref<128x128xf32, #tpu.memory_space<vmem>>, vector<128x128xf32>
    %cst = arith.constant dense<0.000000e+00> : vector<128x128xf32>
    %2 = tpu.matmul %0, %1, %cst {dimension_numbers = #tpu.dot_dimension_numbers<[1], [0], [0], [1], [0, 0, 1, 1], [], []>} : vector<128x128xf32>, vector<128x128xf32>, vector<128x128xf32> -> vector<128x128xf32>
    %c0_3 = arith.constant 0 : index
    %c0_4 = arith.constant 0 : index
    %3 = vector.load %arg3[%c0_3, %c0_4] : memref<1x128xf32, #tpu.memory_space<vmem>>, vector<1x128xf32>
    %4 = vector.broadcast %3 : vector<1x128xf32> to vector<128x128xf32>
    %5 = arith.addf %2, %4 : vector<128x128xf32>
    %c0_5 = arith.constant 0 : index
    %c0_6 = arith.constant 0 : index
    %6 = vector.load %arg4[%c0_5, %c0_6] : memref<128x128xf32, #tpu.memory_space<vmem>>, vector<128x128xf32>
    tpu.vector_store %arg4[%c0_5, %c0_6], %5 {strides = array<i32>} : memref<128x128xf32, #tpu.memory_space<vmem>>, vector<128x128xf32>,
    return
  }
  func.func @transform_0(%arg0: i32) -> (i32, i32) {
    %c0_i32 = arith.constant 0 : i32
    %c0_i32_0 = arith.constant 0 : i32
    return %arg0, %c0_i32 : i32, i32
  }
  func.func @transform_1(%arg0: i32) -> (i32, i32) {
    %c0_i32 = arith.constant 0 : i32
    %c0_i32_0 = arith.constant 0 : i32
    %c0_i32_1 = arith.constant 0 : i32
    return %c0_i32, %c0_i32_0 : i32, i32
  }
  func.func @transform_2(%arg0: i32) -> (i32, i32) {
    %c0_i32 = arith.constant 0 : i32
    %c0_i32_0 = arith.constant 0 : i32
    %c0_i32_1 = arith.constant 0 : i32
    return %c0_i32, %c0_i32_0 : i32, i32
  }
  func.func @transform_3(%arg0: i32) -> (i32, i32) {
    %c0_i32 = arith.constant 0 : i32
    %c0_i32_0 = arith.constant 0 : i32
    return %arg0, %c0_i32 : i32, i32
  }
}

module attributes {stable_mosaic.version = 11 : i64} {
  func.func @_prop_kernel_resident(%arg0: i32, %arg1: i32, %arg2: memref<128x128xf32, #tpu.memory_space<vmem>>, %arg3: memref<128x128xf32, #tpu.memory_space<vmem>>, %arg4: memref<128x128xf32, #tpu.memory_space<vmem>>) attributes {dimension_semantics = [#tpu.dimension_semantics<parallel>, #tpu.dimension_semantics<arbitrary>], iteration_bounds = array<i64: 1, 1>, scalar_prefetch = 0 : i64, scratch_operands = 0 : i64, tpu.core_type = #tpu.core_type<tc>, window_params = [{transform_indices = @transform_0, window_bounds = array<i64: 128, 128>}, {pipeline_mode = #tpu.pipeline_mode<synchronous>, transform_indices = @transform_1, window_bounds = array<i64: 128, 128>}, {transform_indices = @transform_2, window_bounds = array<i64: 128, 128>}]} {
    %c0_i32 = arith.constant 0 : i32
    %0 = arith.cmpi eq, %arg1, %c0_i32 : i32
    %1 = arith.extui %0 : i1 to i32
    %c0_i32_0 = arith.constant 0 : i32
    %2 = arith.cmpi ne, %1, %c0_i32_0 : i32
    scf.if %2 {
      %cst_7 = arith.constant 0.000000e+00 : f32
      %12 = vector.broadcast %cst_7 : f32 to vector<128x128xf32>
      %c0_8 = arith.constant 0 : index
      %c0_9 = arith.constant 0 : index
      %13 = vector.load %arg4[%c0_8, %c0_9] : memref<128x128xf32, #tpu.memory_space<vmem>>, vector<128x128xf32>
      tpu.vector_store %arg4[%c0_8, %c0_9], %12 {strides = array<i32>} : memref<128x128xf32, #tpu.memory_space<vmem>>, vector<128x128xf32>,
    } else {
    }
    %c128_i32 = arith.constant 128 : i32
    %3 = arith.muli %arg1, %c128_i32 : i32
    %4 = tpu.assume_multiple %3, 128 : i32
    %c0 = arith.constant 0 : index
    %c0_1 = arith.constant 0 : index
    %5 = vector.load %arg4[%c0, %c0_1] : memref<128x128xf32, #tpu.memory_space<vmem>>, vector<128x128xf32>
    %c0_2 = arith.constant 0 : index
    %c0_3 = arith.constant 0 : index
    %6 = vector.load %arg2[%c0_2, %c0_3] : memref<128x128xf32, #tpu.memory_space<vmem>>, vector<128x128xf32>
    %7 = arith.index_cast %4 : i32 to index
    %c0_4 = arith.constant 0 : index
    %8 = vector.load %arg3[%7, %c0_4] : memref<128x128xf32, #tpu.memory_space<vmem>>, vector<128x128xf32>
    %cst = arith.constant dense<0.000000e+00> : vector<128x128xf32>
    %9 = tpu.matmul %6, %8, %cst {dimension_numbers = #tpu.dot_dimension_numbers<[1], [0], [0], [1], [0, 0, 1, 1], [], []>} : vector<128x128xf32>, vector<128x128xf32>, vector<128x128xf32> -> vector<128x128xf32>
    %10 = arith.addf %5, %9 : vector<128x128xf32>
    %c0_5 = arith.constant 0 : index
    %c0_6 = arith.constant 0 : index
    %11 = vector.load %arg4[%c0_5, %c0_6] : memref<128x128xf32, #tpu.memory_space<vmem>>, vector<128x128xf32>
    tpu.vector_store %arg4[%c0_5, %c0_6], %10 {strides = array<i32>} : memref<128x128xf32, #tpu.memory_space<vmem>>, vector<128x128xf32>,
    return
  }
  func.func @transform_0(%arg0: i32, %arg1: i32) -> (i32, i32) {
    %c0_i32 = arith.constant 0 : i32
    return %arg0, %arg1 : i32, i32
  }
  func.func @transform_1(%arg0: i32, %arg1: i32) -> (i32, i32) {
    %c0_i32 = arith.constant 0 : i32
    %c0_i32_0 = arith.constant 0 : i32
    %c0_i32_1 = arith.constant 0 : i32
    return %c0_i32, %c0_i32_0 : i32, i32
  }
  func.func @transform_2(%arg0: i32, %arg1: i32) -> (i32, i32) {
    %c0_i32 = arith.constant 0 : i32
    %c0_i32_0 = arith.constant 0 : i32
    return %arg0, %c0_i32 : i32, i32
  }
}

</mosaic_0001>

<bundles_post_ra>
// kernel: gcn_conv.3
= control target key start
LH: loop header
LB: loop body
LE: loop exit
PB: predicated region body
PF: predicated region fallthrough
CT: control target
= control target key end

     0   :  { %s558_s1 = inlined_call_operand.vmem [shape: f32[128,128], index: 1, kind: input, shape index: {}]   ;;  %s559_s0 = inlined_call_operand.vmem [shape: f32[128,128], index: 0, kind: input, shape index: {}]   ;;  %s560_s2 = inlined_call_operand.vmem [shape: f32[128,128], index: 2, kind: output, shape index: {}]  }
   0x1   :  { %v65_v0 = vld [vmem:[%s558_s1] sm:$0xff]  ;;  %v66_v1 = vld [vmem:[%s558_s1 + $0x8] sm:$0xff]  ;;  %v67_v2 = vld [vmem:[%s558_s1 + $0x10] sm:$0xff] }
   0x2   :  { %v350_v3 = vpack.c.bf16 %v66_v1, %v65_v0  ;;  %v68_v4 = vld [vmem:[%s558_s1 + $0x18] sm:$0xff]  ;;  %v69_v6 = vld [vmem:[%s558_s1 + $0x20] sm:$0xff]  ;;  %v70_v7 = vld [vmem:[%s558_s1 + $0x28] sm:$0xff] }
   0x3   :  { %v354_v5 = vpack.c.bf16 %v68_v4, %v67_v2  ;;  %v358_v8 = vpack.c.bf16 %v70_v7, %v69_v6  ;;  %v48_v9 = vld [vmem:[%s559_s0] sm:$0xff]  ;;  %v71_v11 = vld [vmem:[%s558_s1 + $0x30] sm:$0xff]  ;;  %v72_v12 = vld [vmem:[%s558_s1 + $0x38] sm:$0xff] }
   0x4   :  { %351 = vmatprep.subr.bf16.mxu0 %v350_v3  ;;  %382 = vmatprep.subr.bf16.mxu1 %v350_v3  ;;  %v56_v10 = vld [vmem:[%s559_s0 + $0x40] sm:$0xff]  ;;  %v362_v13 = vpack.c.bf16 %v72_v12, %v71_v11  ;;  %v74_v15 = vld [vmem:[%s558_s1 + $0x48] sm:$0xff]  ;;  %v75_v17 = vld [vmem:[%s558_s1 + $0x50] sm:$0xff] }
   0x5   :  { %353 = vmatpush3.bf16.msra.mxu0 %v350_v3  ;;  %390 = vmatpush3.bf16.msra.mxu1 %v350_v3  ;;  %v73_v14 = vld [vmem:[%s558_s1 + $0x40] sm:$0xff]  ;;  %v76_v18 = vld [vmem:[%s558_s1 + $0x58] sm:$0xff]  ;;  %v78_v21 = vld [vmem:[%s558_s1 + $0x68] sm:$0xff] }
   0x6   :  { %355 = vmatprep.subr.bf16.mxu0 %v354_v5  ;;  %383 = vmatprep.subr.bf16.mxu1 %v354_v5  ;;  %v366_v16 = vpack.c.bf16 %v74_v15, %v73_v14  ;;  %v370_v19 = vpack.c.bf16 %v76_v18, %v75_v17  ;;  %v77_v20 = vld [vmem:[%s558_s1 + $0x60] sm:$0xff]  ;;  %v79_v23 = vld [vmem:[%s558_s1 + $0x70] sm:$0xff]  ;;  %v80_v24 = vld [vmem:[%s558_s1 + $0x78] sm:$0xff] }
   0x7   :  { %326 = vmatprep.mubr.f32.mxu0 %v48_v9  ;;  %338 = vmatprep.mubr.f32.mxu1 %v56_v10  ;;  %v374_v22 = vpack.c.bf16 %v78_v21, %v77_v20  ;;  %v378_v25 = vpack.c.bf16 %v80_v24, %v79_v23  ;;  %v49_v26 = vld [vmem:[%s559_s0 + $0x8] sm:$0xff]  ;;  %v50_v28 = vld [vmem:[%s559_s0 + $0x10] sm:$0xff]  ;;  %v51_v30 = vld [vmem:[%s559_s0 + $0x18] sm:$0xff] }
   0x8   :  { %v57_v27 = vld [vmem:[%s559_s0 + $0x48] sm:$0xff]  ;;  %v58_v29 = vld [vmem:[%s559_s0 + $0x50] sm:$0xff]  ;;  %v59_v31 = vld [vmem:[%s559_s0 + $0x58] sm:$0xff] }
   0x9   :  { %357 = vmatpush3.bf16.msra.mxu0 %v354_v5  ;;  %391 = vmatpush3.bf16.msra.mxu1 %v354_v5  ;;  %v52_v32 = vld [vmem:[%s559_s0 + $0x20] sm:$0xff]  ;;  %v53_v34 = vld [vmem:[%s559_s0 + $0x28] sm:$0xff]  ;;  %v54_v36 = vld [vmem:[%s559_s0 + $0x30] sm:$0xff] }
   0xa   :  { %359 = vmatprep.subr.bf16.mxu0 %v358_v8  ;;  %384 = vmatprep.subr.bf16.mxu1 %v358_v8  ;;  %v60_v33 = vld [vmem:[%s559_s0 + $0x60] sm:$0xff]  ;;  %v61_v35 = vld [vmem:[%s559_s0 + $0x68] sm:$0xff]  ;;  %v62_v37 = vld [vmem:[%s559_s0 + $0x70] sm:$0xff] }
   0xb   :  { %v55_v38 = vld [vmem:[%s559_s0 + $0x38] sm:$0xff] }
   0xc   :  { %v63_v39 = vld [vmem:[%s559_s0 + $0x78] sm:$0xff] }
   0xd   :  { %361 = vmatpush3.bf16.msra.mxu0 %v358_v8  ;;  %392 = vmatpush3.bf16.msra.mxu1 %v358_v8 }
   0xe   :  { %363 = vmatprep.subr.bf16.mxu0 %v362_v13  ;;  %385 = vmatprep.subr.bf16.mxu1 %v362_v13 }
  0x11   :  { %365 = vmatpush3.bf16.msra.mxu0 %v362_v13  ;;  %393 = vmatpush3.bf16.msra.mxu1 %v362_v13 }
  0x12   :  { %367 = vmatprep.subr.bf16.mxu0 %v366_v16  ;;  %386 = vmatprep.subr.bf16.mxu1 %v366_v16 }
  0x15   :  { %369 = vmatpush3.bf16.msra.mxu0 %v366_v16  ;;  %394 = vmatpush3.bf16.msra.mxu1 %v366_v16 }
  0x16   :  { %371 = vmatprep.subr.bf16.mxu0 %v370_v19  ;;  %387 = vmatprep.subr.bf16.mxu1 %v370_v19 }
  0x19   :  { %373 = vmatpush3.bf16.msra.mxu0 %v370_v19  ;;  %395 = vmatpush3.bf16.msra.mxu1 %v370_v19 }
  0x1a   :  { %375 = vmatprep.subr.bf16.mxu0 %v374_v22  ;;  %388 = vmatprep.subr.bf16.mxu1 %v374_v22 }
  0x1d   :  { %377 = vmatpush3.bf16.msra.mxu0 %v374_v22  ;;  %396 = vmatpush3.bf16.msra.mxu1 %v374_v22 }
  0x1e   :  { %379 = vmatprep.subr.bf16.mxu0 %v378_v25  ;;  %389 = vmatprep.subr.bf16.mxu1 %v378_v25 }
  0x21   :  { %381 = vmatpush3.bf16.msra.mxu0 %v378_v25  ;;  %397 = vmatpush3.bf16.msra.mxu1 %v378_v25 }
  0x24   :  { %327 = vmatmul.mubr.f32.vlgmr.msra.gmra.mrb[0].mxu0 %v49_v26  ;;  %339 = vmatmul.mubr.f32.vlgmr.msra.gmra.mrb[0].mxu1 %v57_v27 }
  0x25   :  { %329 = vmatprep.mubr.f32.mxu0 %v50_v28  ;;  %341 = vmatprep.mubr.f32.mxu1 %v58_v29 }
  0x28   :  { %330 = vmatmul.mubr.f32.gmra.mrb[2].mxu0 %v51_v30  ;;  %342 = vmatmul.mubr.f32.gmra.mrb[2].mxu1 %v59_v31 }
  0x29   :  { %332 = vmatprep.mubr.f32.mxu0 %v52_v32  ;;  %344 = vmatprep.mubr.f32.mxu1 %v60_v33 }
  0x2c   :  { %333 = vmatmul.mubr.f32.gmra.mrb[4].mxu0 %v53_v34  ;;  %345 = vmatmul.mubr.f32.gmra.mrb[4].mxu1 %v61_v35 }
  0x2d   :  { %335 = vmatprep.mubr.f32.mxu0 %v54_v36  ;;  %347 = vmatprep.mubr.f32.mxu1 %v62_v37 }
  0x30   :  { %336 = vmatmul.mubr.f32.gmra.mrb[6].mxu0 %v55_v38  ;;  %348 = vmatmul.mubr.f32.gmra.mrb[6].mxu1 %v63_v39 }
  0xf7   :  { %v328_v40 = vpop.f32.mrb[0].mxu0  ;;  %v340_v41 = vpop.f32.mrb[0].mxu1 }
  0xf8   :  { %v147_v42 = vpop.f32.mrb[1].mxu0  ;;  %v187_v43 = vpop.f32.mrb[1].mxu1  ;;  %243 = vst [vmem:[%s560_s2 + $0x8] sm:$0xff] %v328_v40  ;;  %251 = vst [vmem:[%s560_s2 + $0x48] sm:$0xff] %v340_v41 }
  0xf9   :  { %242 = vst [vmem:[%s560_s2] sm:$0xff] %v147_v42  ;;  %250 = vst [vmem:[%s560_s2 + $0x40] sm:$0xff] %v187_v43 }
  0xfb   :  { %v331_v44 = vpop.f32.mrb[2].mxu0  ;;  %v343_v45 = vpop.f32.mrb[2].mxu1 }
  0xfc   :  { %v157_v46 = vpop.f32.mrb[3].mxu0  ;;  %v197_v47 = vpop.f32.mrb[3].mxu1  ;;  %245 = vst [vmem:[%s560_s2 + $0x18] sm:$0xff] %v331_v44  ;;  %253 = vst [vmem:[%s560_s2 + $0x58] sm:$0xff] %v343_v45 }
  0xfd   :  { %244 = vst [vmem:[%s560_s2 + $0x10] sm:$0xff] %v157_v46  ;;  %252 = vst [vmem:[%s560_s2 + $0x50] sm:$0xff] %v197_v47 }
  0xff   :  { %v334_v48 = vpop.f32.mrb[4].mxu0  ;;  %v346_v49 = vpop.f32.mrb[4].mxu1 }
 0x100   :  { %v167_v50 = vpop.f32.mrb[5].mxu0  ;;  %v207_v51 = vpop.f32.mrb[5].mxu1  ;;  %247 = vst [vmem:[%s560_s2 + $0x28] sm:$0xff] %v334_v48  ;;  %255 = vst [vmem:[%s560_s2 + $0x68] sm:$0xff] %v346_v49 }
 0x101   :  { %246 = vst [vmem:[%s560_s2 + $0x20] sm:$0xff] %v167_v50  ;;  %254 = vst [vmem:[%s560_s2 + $0x60] sm:$0xff] %v207_v51 }
 0x103   :  { %v337_v52 = vpop.f32.mrb[6].mxu0  ;;  %v349_v53 = vpop.f32.mrb[6].mxu1 }
 0x104   :  { %v177_v54 = vpop.f32.mrb[7].mxu0  ;;  %v217_v55 = vpop.f32.mrb[7].mxu1  ;;  %249 = vst [vmem:[%s560_s2 + $0x38] sm:$0xff] %v337_v52  ;;  %257 = vst [vmem:[%s560_s2 + $0x78] sm:$0xff] %v349_v53 }
 0x105   :  { %248 = vst [vmem:[%s560_s2 + $0x30] sm:$0xff] %v177_v54  ;;  %256 = vst [vmem:[%s560_s2 + $0x70] sm:$0xff] %v217_v55 }

// kernel: gcn_conv.2
= control target key start
LH: loop header
LB: loop body
LE: loop exit
PB: predicated region body
PF: predicated region fallthrough
CT: control target
= control target key end

     0   :  { %s522_s1 = inlined_call_operand.vmem [shape: f32[128,128], index: 1, kind: input, shape index: {}]   ;;  %s523_s0 = inlined_call_operand.vmem [shape: f32[128,128], index: 0, kind: input, shape index: {}]   ;;  %s524_s2 = inlined_call_operand.vmem [shape: f32[1,128], index: 2, kind: input, shape index: {}]   ;;  %s525_s3 = inlined_call_operand.vmem [shape: f32[128,128], index: 3, kind: output, shape index: {}]  }
   0x1   :  { %v30_v0 = vld [vmem:[%s522_s1] sm:$0xff]  ;;  %v31_v1 = vld [vmem:[%s522_s1 + $0x8] sm:$0xff]  ;;  %v32_v2 = vld [vmem:[%s522_s1 + $0x10] sm:$0xff] }
   0x2   :  { %v307_v3 = vpack.c.bf16 %v31_v1, %v30_v0  ;;  %v33_v4 = vld [vmem:[%s522_s1 + $0x18] sm:$0xff]  ;;  %v34_v6 = vld [vmem:[%s522_s1 + $0x20] sm:$0xff]  ;;  %v35_v7 = vld [vmem:[%s522_s1 + $0x28] sm:$0xff] }
   0x3   :  { %v311_v5 = vpack.c.bf16 %v33_v4, %v32_v2  ;;  %v315_v8 = vpack.c.bf16 %v35_v7, %v34_v6  ;;  %v14_v9 = vld [vmem:[%s523_s0] sm:$0xff]  ;;  %v36_v11 = vld [vmem:[%s522_s1 + $0x30] sm:$0xff]  ;;  %v37_v12 = vld [vmem:[%s522_s1 + $0x38] sm:$0xff] }
   0x4   :  { %308 = vmatprep.subr.bf16.mxu0 %v307_v3  ;;  %339 = vmatprep.subr.bf16.mxu1 %v307_v3  ;;  %v22_v10 = vld [vmem:[%s523_s0 + $0x40] sm:$0xff]  ;;  %v319_v13 = vpack.c.bf16 %v37_v12, %v36_v11  ;;  %v39_v15 = vld [vmem:[%s522_s1 + $0x48] sm:$0xff]  ;;  %v40_v17 = vld [vmem:[%s522_s1 + $0x50] sm:$0xff] }
   0x5   :  { %310 = vmatpush3.bf16.msra.mxu0 %v307_v3  ;;  %347 = vmatpush3.bf16.msra.mxu1 %v307_v3  ;;  %v38_v14 = vld [vmem:[%s522_s1 + $0x40] sm:$0xff]  ;;  %v41_v18 = vld [vmem:[%s522_s1 + $0x58] sm:$0xff]  ;;  %v43_v21 = vld [vmem:[%s522_s1 + $0x68] sm:$0xff] }
   0x6   :  { %312 = vmatprep.subr.bf16.mxu0 %v311_v5  ;;  %340 = vmatprep.subr.bf16.mxu1 %v311_v5  ;;  %v323_v16 = vpack.c.bf16 %v39_v15, %v38_v14  ;;  %v327_v19 = vpack.c.bf16 %v41_v18, %v40_v17  ;;  %v42_v20 = vld [vmem:[%s522_s1 + $0x60] sm:$0xff]  ;;  %v44_v23 = vld [vmem:[%s522_s1 + $0x70] sm:$0xff]  ;;  %v45_v24 = vld [vmem:[%s522_s1 + $0x78] sm:$0xff] }
   0x7   :  { %283 = vmatprep.mubr.f32.mxu0 %v14_v9  ;;  %295 = vmatprep.mubr.f32.mxu1 %v22_v10  ;;  %v331_v22 = vpack.c.bf16 %v43_v21, %v42_v20  ;;  %v335_v25 = vpack.c.bf16 %v45_v24, %v44_v23  ;;  %v15_v26 = vld [vmem:[%s523_s0 + $0x8] sm:$0xff]  ;;  %v16_v28 = vld [vmem:[%s523_s0 + $0x10] sm:$0xff]  ;;  %v17_v30 = vld [vmem:[%s523_s0 + $0x18] sm:$0xff] }
   0x8   :  { %v23_v27 = vld [vmem:[%s523_s0 + $0x48] sm:$0xff]  ;;  %v24_v29 = vld [vmem:[%s523_s0 + $0x50] sm:$0xff]  ;;  %v25_v31 = vld [vmem:[%s523_s0 + $0x58] sm:$0xff] }
   0x9   :  { %314 = vmatpush3.bf16.msra.mxu0 %v311_v5  ;;  %348 = vmatpush3.bf16.msra.mxu1 %v311_v5  ;;  %v18_v32 = vld [vmem:[%s523_s0 + $0x20] sm:$0xff]  ;;  %v19_v34 = vld [vmem:[%s523_s0 + $0x28] sm:$0xff]  ;;  %v20_v36 = vld [vmem:[%s523_s0 + $0x30] sm:$0xff] }
   0xa   :  { %316 = vmatprep.subr.bf16.mxu0 %v315_v8  ;;  %341 = vmatprep.subr.bf16.mxu1 %v315_v8  ;;  %v26_v33 = vld [vmem:[%s523_s0 + $0x60] sm:$0xff]  ;;  %v27_v35 = vld [vmem:[%s523_s0 + $0x68] sm:$0xff]  ;;  %v28_v37 = vld [vmem:[%s523_s0 + $0x70] sm:$0xff] }
   0xb   :  { %v21_v38 = vld [vmem:[%s523_s0 + $0x38] sm:$0xff]  ;;  %v218_v40 = vld [vmem:[%s524_s2] ss:$0 sm:$0xff] }
   0xc   :  { %v29_v39 = vld [vmem:[%s523_s0 + $0x78] sm:$0xff] }
   0xd   :  { %318 = vmatpush3.bf16.msra.mxu0 %v315_v8  ;;  %349 = vmatpush3.bf16.msra.mxu1 %v315_v8 }
   0xe   :  { %320 = vmatprep.subr.bf16.mxu0 %v319_v13  ;;  %342 = vmatprep.subr.bf16.mxu1 %v319_v13 }
  0x11   :  { %322 = vmatpush3.bf16.msra.mxu0 %v319_v13  ;;  %350 = vmatpush3.bf16.msra.mxu1 %v319_v13 }
  0x12   :  { %324 = vmatprep.subr.bf16.mxu0 %v323_v16  ;;  %343 = vmatprep.subr.bf16.mxu1 %v323_v16 }
  0x15   :  { %326 = vmatpush3.bf16.msra.mxu0 %v323_v16  ;;  %351 = vmatpush3.bf16.msra.mxu1 %v323_v16 }
  0x16   :  { %328 = vmatprep.subr.bf16.mxu0 %v327_v19  ;;  %344 = vmatprep.subr.bf16.mxu1 %v327_v19 }
  0x19   :  { %330 = vmatpush3.bf16.msra.mxu0 %v327_v19  ;;  %352 = vmatpush3.bf16.msra.mxu1 %v327_v19 }
  0x1a   :  { %332 = vmatprep.subr.bf16.mxu0 %v331_v22  ;;  %345 = vmatprep.subr.bf16.mxu1 %v331_v22 }
  0x1d   :  { %334 = vmatpush3.bf16.msra.mxu0 %v331_v22  ;;  %353 = vmatpush3.bf16.msra.mxu1 %v331_v22 }
  0x1e   :  { %336 = vmatprep.subr.bf16.mxu0 %v335_v25  ;;  %346 = vmatprep.subr.bf16.mxu1 %v335_v25 }
  0x21   :  { %338 = vmatpush3.bf16.msra.mxu0 %v335_v25  ;;  %354 = vmatpush3.bf16.msra.mxu1 %v335_v25 }
  0x24   :  { %284 = vmatmul.mubr.f32.vlgmr.msra.gmra.mrb[0].mxu0 %v15_v26  ;;  %296 = vmatmul.mubr.f32.vlgmr.msra.gmra.mrb[0].mxu1 %v23_v27 }
  0x25   :  { %286 = vmatprep.mubr.f32.mxu0 %v16_v28  ;;  %298 = vmatprep.mubr.f32.mxu1 %v24_v29 }
  0x28   :  { %287 = vmatmul.mubr.f32.gmra.mrb[2].mxu0 %v17_v30  ;;  %299 = vmatmul.mubr.f32.gmra.mrb[2].mxu1 %v25_v31 }
  0x29   :  { %289 = vmatprep.mubr.f32.mxu0 %v18_v32  ;;  %301 = vmatprep.mubr.f32.mxu1 %v26_v33 }
  0x2c   :  { %290 = vmatmul.mubr.f32.gmra.mrb[4].mxu0 %v19_v34  ;;  %302 = vmatmul.mubr.f32.gmra.mrb[4].mxu1 %v27_v35 }
  0x2d   :  { %292 = vmatprep.mubr.f32.mxu0 %v20_v36  ;;  %304 = vmatprep.mubr.f32.mxu1 %v28_v37 }
  0x30   :  { %293 = vmatmul.mubr.f32.gmra.mrb[6].mxu0 %v21_v38  ;;  %305 = vmatmul.mubr.f32.gmra.mrb[6].mxu1 %v29_v39 }
  0xf7   :  { %v285_v41 = vpop.f32.mrb[0].mxu0  ;;  %v297_v42 = vpop.f32.mrb[0].mxu1 }
  0xf8   :  { %v125_v43 = vadd.f32 %v285_v41, %v218_v40  ;;  %v165_v44 = vadd.f32 %v297_v42, %v218_v40  ;;  %v119_v45 = vpop.f32.mrb[1].mxu0  ;;  %v159_v46 = vpop.f32.mrb[1].mxu1 }
  0xf9   :  { %v120_v47 = vadd.f32 %v218_v40, %v119_v45  ;;  %v160_v48 = vadd.f32 %v218_v40, %v159_v46 }
  0xfa   :  { %199 = vst [vmem:[%s525_s3 + $0x8] sm:$0xff] %v125_v43  ;;  %207 = vst [vmem:[%s525_s3 + $0x48] sm:$0xff] %v165_v44 }
  0xfb   :  { %198 = vst [vmem:[%s525_s3] sm:$0xff] %v120_v47  ;;  %206 = vst [vmem:[%s525_s3 + $0x40] sm:$0xff] %v160_v48  ;;  %v288_v49 = vpop.f32.mrb[2].mxu0  ;;  %v300_v50 = vpop.f32.mrb[2].mxu1 }
  0xfc   :  { %v135_v51 = vadd.f32 %v288_v49, %v218_v40  ;;  %v175_v52 = vadd.f32 %v300_v50, %v218_v40  ;;  %v129_v53 = vpop.f32.mrb[3].mxu0  ;;  %v169_v54 = vpop.f32.mrb[3].mxu1 }
  0xfd   :  { %v130_v55 = vadd.f32 %v218_v40, %v129_v53  ;;  %v170_v56 = vadd.f32 %v218_v40, %v169_v54 }
  0xfe   :  { %201 = vst [vmem:[%s525_s3 + $0x18] sm:$0xff] %v135_v51  ;;  %209 = vst [vmem:[%s525_s3 + $0x58] sm:$0xff] %v175_v52 }
  0xff   :  { %200 = vst [vmem:[%s525_s3 + $0x10] sm:$0xff] %v130_v55  ;;  %208 = vst [vmem:[%s525_s3 + $0x50] sm:$0xff] %v170_v56  ;;  %v291_v57 = vpop.f32.mrb[4].mxu0  ;;  %v303_v58 = vpop.f32.mrb[4].mxu1 }
 0x100   :  { %v145_v59 = vadd.f32 %v291_v57, %v218_v40  ;;  %v185_v60 = vadd.f32 %v303_v58, %v218_v40  ;;  %v139_v61 = vpop.f32.mrb[5].mxu0  ;;  %v179_v62 = vpop.f32.mrb[5].mxu1 }
 0x101   :  { %v140_v63 = vadd.f32 %v218_v40, %v139_v61  ;;  %v180_v0 = vadd.f32 %v218_v40, %v179_v62 }
 0x102   :  { %203 = vst [vmem:[%s525_s3 + $0x28] sm:$0xff] %v145_v59  ;;  %211 = vst [vmem:[%s525_s3 + $0x68] sm:$0xff] %v185_v60 }
 0x103   :  { %202 = vst [vmem:[%s525_s3 + $0x20] sm:$0xff] %v140_v63  ;;  %210 = vst [vmem:[%s525_s3 + $0x60] sm:$0xff] %v180_v0  ;;  %v294_v1 = vpop.f32.mrb[6].mxu0  ;;  %v306_v2 = vpop.f32.mrb[6].mxu1 }
 0x104   :  { %v155_v3 = vadd.f32 %v294_v1, %v218_v40  ;;  %v195_v4 = vadd.f32 %v306_v2, %v218_v40  ;;  %v149_v5 = vpop.f32.mrb[7].mxu0  ;;  %v189_v6 = vpop.f32.mrb[7].mxu1 }
 0x105   :  { %v150_v7 = vadd.f32 %v218_v40, %v149_v5  ;;  %v190_v8 = vadd.f32 %v218_v40, %v189_v6 }
 0x106   :  { %205 = vst [vmem:[%s525_s3 + $0x38] sm:$0xff] %v155_v3  ;;  %213 = vst [vmem:[%s525_s3 + $0x78] sm:$0xff] %v195_v4 }
 0x107   :  { %204 = vst [vmem:[%s525_s3 + $0x30] sm:$0xff] %v150_v7  ;;  %212 = vst [vmem:[%s525_s3 + $0x70] sm:$0xff] %v190_v8 }

</bundles_post_ra>
